<compile_context>
chip_gen: v7x
topology: tpu7x:2x2x1
jax: 0.10.0
libtpu: 0.0.40
codegen_flags: <defaults>
</compile_context>

<pallas_src>
import functools

import jax
import jax.numpy as jnp
from jax import lax
from jax.experimental import pallas as pl
from jax.experimental.pallas import tpu as pltpu

ALPHA = 0.25
GAMMA = 2.0
LANES = 128
SUBLANES = 8


def _focal_loss_kernel(x_ref, t_ref, psum_ref, *, alpha, gamma, tile_rows,
                       valid_in_last, need_mask):
    x = x_ref[...].astype(jnp.float32)
    t = t_ref[...].astype(jnp.float32)

    # Shared exponential: e = exp(-|x|) feeds both the stable BCE term and sigmoid.
    e = jnp.exp(-jnp.abs(x))
    # Numerically stable BCE-with-logits (== nn.BCEWithLogitsLoss(reduction='none')):
    #   bce = max(x, 0) - x*t + log1p(exp(-|x|))
    bce = jnp.maximum(x, 0.0) - x * t + jnp.log1p(e)

    # s = 1/(1+e) = sigmoid(|x|), via approx reciprocal (EUP) + one Newton step.
    denom = 1.0 + e
    r = pl.reciprocal(denom, approx=True)
    s = r * (2.0 - denom * r)

    # probs = where(x>=0, s, e*s); pt = where(t==1, probs, 1-probs); w = 1-pt.
    # Using 1-s == e*s and 1-e*s == s, this collapses to a single select:
    #   w = where((t==1) XOR (x>=0), s, e*s)
    w = jnp.where(jnp.logical_xor(t == 1.0, x >= 0.0), s, e * s)

    if gamma == 2.0:          # integer gamma: no pow (no log/exp pair on the EUP)
        wg = w * w
    elif gamma == 1.0:
        wg = w
    else:
        wg = w ** jnp.float32(gamma)
    focal = (alpha * wg) * bce

    # Per-block partial sum: fold the block onto an (8,128) vreg footprint with plain
    # VPU adds; the single cross-lane reduction happens outside the kernel.
    def block_sum(v):
        return jnp.sum(v.reshape(tile_rows // SUBLANES, SUBLANES, LANES), axis=0)

    psum_ref[...] = block_sum(focal)

    if need_mask:
        # Lane-padding / partial-tail-row garbage only exists in the LAST block:
        # recompute the masked partial sum there and overwrite. Indices are
        # block-local, so they never overflow int32 even for multi-GB inputs.
        @pl.when(pl.program_id(0) == pl.num_programs(0) - 1)
        def _():
            row = lax.broadcasted_iota(jnp.int32, (tile_rows, LANES), 0)
            col = lax.broadcasted_iota(jnp.int32, (tile_rows, LANES), 1)
            keep = row * LANES + col < valid_in_last
            psum_ref[...] = block_sum(jnp.where(keep, focal, 0.0))


def focal_loss(inputs, targets, alpha=ALPHA, gamma=GAMMA, reduction="mean",
               tile_rows=4096):
    """Pallas focal loss. inputs/targets: arrays of identical shape (e.g. NCHW)."""
    assert inputs.shape == targets.shape
    if reduction not in ("mean", "sum"):
        # TODO(synk): reduction='none' needs the full per-element map as output; this
        # kernel only emits the reduced path (the module default).
        raise NotImplementedError("reduction='none' not implemented in the kernel")

    n_total = int(inputs.size)
    itemsize = jnp.dtype(inputs.dtype).itemsize

    # Sublane packing factor: 8 for f32, 16 for bf16, 32 for int8/fp8. Keeping every
    # block a multiple of (pack, 128) keeps the native-dtype path a legal min-tile.
    pack = SUBLANES * max(1, 4 // itemsize)

    # Flatten in native dtype (no wrapper upcast -> half the HBM bytes for bf16).
    flat_x = inputs.reshape(-1)
    flat_t = targets.reshape(-1)

    # Minimal zero-pad to a whole (pack, 128) slab multiple; padded elements are
    # masked to exactly 0 in-kernel (last block only).
    pad = (-n_total) % (pack * LANES)
    if pad:
        flat_x = jnp.pad(flat_x, (0, pad))
        flat_t = jnp.pad(flat_t, (0, pad))

    rows = flat_x.shape[0] // LANES          # multiple of `pack` by construction
    x2d = flat_x.reshape(rows, LANES)
    t2d = flat_t.reshape(rows, LANES)

    # Block rows: large (default 4096 -> 2 MiB f32 per input per buffer) and a
    # multiple of the packing factor, capped by the (padded) array extent.
    tr_cap = max(pack, (int(tile_rows) // pack) * pack)
    tr = min(tr_cap, rows)
    num_blocks = pl.cdiv(rows, tr)
    need_mask = (pad != 0) or (rows % tr != 0)
    # Valid-element count inside the last block (block-local, <= tr*128, int32-safe).
    valid_in_last = n_total - (num_blocks - 1) * tr * LANES

    kernel = functools.partial(
        _focal_loss_kernel, alpha=float(alpha), gamma=float(gamma),
        tile_rows=tr, valid_in_last=int(valid_in_last), need_mask=need_mask)

    in_bytes = 2 * n_total * itemsize
    out_bytes = num_blocks * SUBLANES * LANES * 4

    partials = pl.pallas_call(
        kernel,
        out_shape=jax.ShapeDtypeStruct((num_blocks * SUBLANES, LANES), jnp.float32),
        grid_spec=pltpu.PrefetchScalarGridSpec(
            num_scalar_prefetch=0,
            grid=(num_blocks,),
            in_specs=[
                pl.BlockSpec((tr, LANES), lambda i: (i, 0)),
                pl.BlockSpec((tr, LANES), lambda i: (i, 0)),
            ],
            out_specs=pl.BlockSpec((SUBLANES, LANES), lambda i: (i, 0)),
        ),
        compiler_params=pltpu.CompilerParams(
            dimension_semantics=("parallel",),
        ),
        cost_estimate=pl.CostEstimate(
            flops=20 * n_total,
            transcendentals=3 * n_total,
            bytes_accessed=in_bytes + out_bytes,
        ),
    )(x2d, t2d)

    total = jnp.sum(partials)
    if reduction == "mean":
        return total / jnp.float32(n_total)
    return total  # 'sum': raw sum, no mean*N round-trip


def _reference_focal_loss(inputs, targets, alpha=ALPHA, gamma=GAMMA):
    x = inputs.astype(jnp.float32)
    t = targets.astype(jnp.float32)
    bce = jnp.maximum(x, 0.0) - x * t + jnp.log1p(jnp.exp(-jnp.abs(x)))
    p = jax.nn.sigmoid(x)
    pt = jnp.where(t == 1.0, p, 1.0 - p)
    return jnp.mean(alpha * (1.0 - pt) ** gamma * bce)


if __name__ == "__main__":
    key = jax.random.PRNGKey(0)
    k1, k2, k3, k4, k5, k6 = jax.random.split(key, 6)

    # Case 1: NCHW (2, 4, 16, 16) f32 — clean path (no pad, no mask, single block).
    x1 = jax.random.normal(k1, (2, 4, 16, 16), dtype=jnp.float32)
    t1 = (jax.random.uniform(k2, (2, 4, 16, 16)) > 0.5).astype(jnp.float32)
    loss1 = focal_loss(x1, t1)
    jax.block_until_ready(loss1)
    ref1 = _reference_focal_loss(x1, t1)
    assert jnp.allclose(loss1, ref1, rtol=1e-5, atol=1e-6), (loss1, ref1)

    # Case 2: odd shape f32 — exercises lane padding and last-block-only masking.
    x2 = jax.random.normal(k3, (3, 5, 17, 19), dtype=jnp.float32)
    t2 = (jax.random.uniform(k4, (3, 5, 17, 19)) > 0.5).astype(jnp.float32)
    loss2 = focal_loss(x2, t2)
    jax.block_until_ready(loss2)
    ref2 = _reference_focal_loss(x2, t2)
    assert jnp.allclose(loss2, ref2, rtol=1e-5, atol=1e-6), (loss2, ref2)

    # Case 3: native bf16 inputs — exercises the (16,128) packed-tile path.
    x3 = jax.random.normal(k5, (2, 3, 13, 21), dtype=jnp.bfloat16)
    t3 = (jax.random.uniform(k6, (2, 3, 13, 21)) > 0.5).astype(jnp.bfloat16)
    loss3 = focal_loss(x3, t3)
    jax.block_until_ready(loss3)
    ref3 = _reference_focal_loss(x3, t3)
    assert jnp.allclose(loss3, ref3, rtol=1e-5, atol=1e-6), (loss3, ref3)

    print("KERNEL_OK")
</pallas_src>

<mosaic_0001>
module attributes {stable_mosaic.version = 11 : i64} {
  func.func @_focal_loss_kernel(%arg0: i32, %arg1: memref<16x128xf32, #tpu.memory_space<vmem>>, %arg2: memref<16x128xf32, #tpu.memory_space<vmem>>, %arg3: memref<8x128xf32, #tpu.memory_space<vmem>>) attributes {dimension_semantics = [#tpu.dimension_semantics<parallel>], iteration_bounds = array<i64: 1>, scalar_prefetch = 0 : i64, scratch_operands = 0 : i64, tpu.core_type = #tpu.core_type<tc>, window_params = [{transform_indices = @transform_0, window_bounds = array<i64: 16, 128>}, {transform_indices = @transform_1, window_bounds = array<i64: 16, 128>}, {transform_indices = @transform_2, window_bounds = array<i64: 8, 128>}]} {
    %c0 = arith.constant 0 : index
    %c0_0 = arith.constant 0 : index
    %0 = vector.load %arg1[%c0, %c0_0] : memref<16x128xf32, #tpu.memory_space<vmem>>, vector<16x128xf32>
    %c0_1 = arith.constant 0 : index
    %c0_2 = arith.constant 0 : index
    %1 = vector.load %arg2[%c0_1, %c0_2] : memref<16x128xf32, #tpu.memory_space<vmem>>, vector<16x128xf32>
    %2 = math.absf %0 : vector<16x128xf32>
    %cst = arith.constant 0.000000e+00 : f32
    %3 = vector.broadcast %cst : f32 to vector<16x128xf32>
    %4 = arith.subf %3, %2 : vector<16x128xf32>
    %5 = math.exp %4 : vector<16x128xf32>
    %cst_3 = arith.constant 0.000000e+00 : f32
    %6 = vector.broadcast %cst_3 : f32 to vector<16x128xf32>
    %7 = arith.maximumf %0, %6 : vector<16x128xf32>
    %8 = arith.mulf %0, %1 : vector<16x128xf32>
    %9 = arith.subf %7, %8 : vector<16x128xf32>
    %10 = math.log1p %5 : vector<16x128xf32>
    %11 = arith.addf %9, %10 : vector<16x128xf32>
    %cst_4 = arith.constant 1.000000e+00 : f32
    %12 = vector.broadcast %cst_4 : f32 to vector<16x128xf32>
    %13 = arith.addf %12, %5 : vector<16x128xf32>
    %14 = tpu.reciprocal %13 {approx = true} : vector<16x128xf32> -> vector<16x128xf32>
    %15 = arith.mulf %13, %14 : vector<16x128xf32>
    %cst_5 = arith.constant 2.000000e+00 : f32
    %16 = vector.broadcast %cst_5 : f32 to vector<16x128xf32>
    %17 = arith.subf %16, %15 : vector<16x128xf32>
    %18 = arith.mulf %14, %17 : vector<16x128xf32>
    %cst_6 = arith.constant 1.000000e+00 : f32
    %19 = vector.broadcast %cst_6 : f32 to vector<16x128xf32>
    %20 = arith.cmpf oeq, %1, %19 : vector<16x128xf32>
    %cst_7 = arith.constant 0.000000e+00 : f32
    %21 = vector.broadcast %cst_7 : f32 to vector<16x128xf32>
    %22 = arith.cmpf oge, %0, %21 : vector<16x128xf32>
    %23 = arith.xori %20, %22 : vector<16x128xi1>
    %24 = arith.mulf %5, %18 : vector<16x128xf32>
    %25 = arith.select %23, %18, %24 : vector<16x128xi1>, vector<16x128xf32>
    %26 = arith.mulf %25, %25 : vector<16x128xf32>
    %cst_8 = arith.constant 2.500000e-01 : f32
    %27 = vector.broadcast %cst_8 : f32 to vector<16x128xf32>
    %28 = arith.mulf %27, %26 : vector<16x128xf32>
    %29 = arith.mulf %28, %11 : vector<16x128xf32>
    %30 = vector.shape_cast %29 : vector<16x128xf32> to vector<2x8x128xf32>
    %cst_9 = arith.constant dense<0.000000e+00> : vector<8x128xf32>
    %31 = vector.multi_reduction <add>, %30, %cst_9 [0] : vector<2x8x128xf32> to vector<8x128xf32>
    %c0_10 = arith.constant 0 : index
    %c0_11 = arith.constant 0 : index
    %32 = vector.load %arg3[%c0_10, %c0_11] : memref<8x128xf32, #tpu.memory_space<vmem>>, vector<8x128xf32>
    tpu.vector_store %arg3[%c0_10, %c0_11], %31 {strides = array<i32>} : memref<8x128xf32, #tpu.memory_space<vmem>>, vector<8x128xf32>,
    return
  }
  func.func @transform_0(%arg0: i32) -> (i32, i32) {
    %c0_i32 = arith.constant 0 : i32
    %c0_i32_0 = arith.constant 0 : i32
    return %arg0, %c0_i32 : i32, i32
  }
  func.func @transform_1(%arg0: i32) -> (i32, i32) {
    %c0_i32 = arith.constant 0 : i32
    %c0_i32_0 = arith.constant 0 : i32
    return %arg0, %c0_i32 : i32, i32
  }
  func.func @transform_2(%arg0: i32) -> (i32, i32) {
    %c0_i32 = arith.constant 0 : i32
    %c0_i32_0 = arith.constant 0 : i32
    return %arg0, %c0_i32 : i32, i32
  }
}

</mosaic_0001>

<bundles_post_ra>
// kernel: tpu_custom_call.1
= control target key start
LH: loop header
LB: loop body
LE: loop exit
PB: predicated region body
PF: predicated region fallthrough
CT: control target
= control target key end

     0   :  { %7 = vsyncpa [#allocation3], 0  ;;  %s275_s0 = inlined_call_operand.hbm [shape: f32[16,128], index: 0, kind: input, shape index: {}]   ;;  %s276_s1 = inlined_call_operand.hbm [shape: f32[16,128], index: 1, kind: input, shape index: {}]   ;;  %s277_s2 = inlined_call_operand.hbm [shape: f32[8,128], index: 2, kind: output, shape index: {}]  }
   0x1   :  { %8 = vsyncpa [#allocation6], 0 }
   0x2   :  { %9 = vsyncpa [#allocation4], 0  ;;  %s211_s9 = smov [#allocation2]   ;;  %s139_s13 = scalar_lea.hbm %s275_s0, 256 }
   0x3   :  { %s15_s10 = sshll.u32 %s211_s9, 4  ;;  %p140_p0 = scmp.ne.s32.totalorder %s275_s0, %s139_s13  ;;  %s16_s10 = int_to_ptr.vmem [resolvable:$true] %s15_s10 }
   0x4   :  { %p143_p1 = scmp.lt.u32.totalorder %s139_s13, %s275_s0 }
   0x6   :  { %p145_p2 = pnand %p143_p1, %p140_p0 }
   0x8   :  { %148 = shalt.err (!%p145_p2)
}
   0x9   :  { %s149_s18 = scalar_lea.vmem %s16_s10, 256  ;;  %p154_p4 = scmp.lt.s32.totalorder %s16_s10, %s16_s10 }
   0xa   :  { %p150_p3 = scmp.ne.s32.totalorder %s16_s10, %s149_s18  ;;  %p155_p5 = scmp.lt.s32.totalorder %s149_s18, %s149_s18 }
   0xc   :  { %p156_p6 = por %p155_p5, %p154_p4 }
   0xe   :  { %p157_p7 = pnand %p156_p6, %p150_p3 }
  0x10   :  { %160 = shalt.err (!%p157_p7)
}
  0x11   :  { %s212_s19 = smov 128   ;;  %s213_s20 = smov 8  }
  0x12   :  { %21 = dma.hbm_to_vmem [thread:$0]  %s275_s0, 256, %s16_s10, [#allocation3], %s212_s19, %s212_s19, %s213_s20  }
  0x13   :  { %s214_s23 = smov [#allocation5]   ;;  %s161_s27 = scalar_lea.hbm %s276_s1, 256 }
  0x14   :  { %s27_s24 = sshll.u32 %s214_s23, 4  ;;  %p162_p8 = scmp.ne.s32.totalorder %s276_s1, %s161_s27  ;;  %s28_s24 = int_to_ptr.vmem [resolvable:$true] %s27_s24 }
  0x15   :  { %p165_p9 = scmp.lt.u32.totalorder %s161_s27, %s276_s1 }
  0x17   :  { %p167_p10 = pnand %p165_p9, %p162_p8 }
  0x19   :  { %170 = shalt.err (!%p167_p10)
}
  0x1a   :  { %s171_s4 = scalar_lea.vmem %s28_s24, 256  ;;  %p176_p12 = scmp.lt.s32.totalorder %s28_s24, %s28_s24 }
  0x1b   :  { %p172_p11 = scmp.ne.s32.totalorder %s28_s24, %s171_s4  ;;  %p177_p13 = scmp.lt.s32.totalorder %s171_s4, %s171_s4 }
  0x1d   :  { %p178_p0 = por %p177_p13, %p176_p12 }
  0x1f   :  { %p179_p1 = pnand %p178_p0, %p172_p11 }
  0x21   :  { %182 = shalt.err (!%p179_p1)
}
  0x22   :  { %33 = dma.hbm_to_vmem [thread:$0]  %s276_s1, 256, %s28_s24, [#allocation6], %s212_s19, %s212_s19, %s213_s20  }
  0x23   :  { %205 = dma.done.wait [#allocation3], 256  }
  0x24   :  { %206 = vsyncadd [#allocation3], 4294967040 }
  0x25   :  { %207 = dma.done.wait [#allocation6], 256  }
  0x26   :  { %208 = vsyncadd [#allocation6], 4294967040  ;;  %v40_v0 = vld [vmem:[#allocation2] sm:$0xff]  ;;  %v41_v1 = vld [vmem:[#allocation2 + $0x8] sm:$0xff]  ;;  %s215_s1 = smov [#allocation7]  }
  0x27   :  { %v44_v2 = vand.u32 2147483647, %v40_v0  ;;  %v45_v3 = vand.u32 2147483647, %v41_v1  ;;  %v42_v14 = vld [vmem:[#allocation5] sm:$0xff]  ;;  %v43_v16 = vld [vmem:[#allocation5 + $0x8] sm:$0xff] }
  0x28   :  { %v52_v20 = vmax.f32 %v40_v0, 0.0  ;;  %v54_v21 = vmul.f32 %v42_v14, %v40_v0  ;;  %v53_v25 = vmax.f32 %v41_v1, 0.0  ;;  %v55_v26 = vmul.f32 %v43_v16, %v41_v1  ;;  %s112_s6 = sshll.u32 %s215_s1, 4  ;;  %s113_s6 = int_to_ptr.vmem [resolvable:$true] %s112_s6 }
  0x29   :  { %v46_v4 = vsub.f32 0.0, %v44_v2  ;;  %v47_v5 = vsub.f32 0.0, %v45_v3  ;;  %vm88_vm0 = vcmp.eq.f32.partialorder %v42_v14, 1.0  ;;  %vm89_vm1 = vcmp.eq.f32.partialorder %v43_v16, 1.0  ;;  %s183_s7 = scalar_lea.vmem %s113_s6, 128  ;;  %p188_p3 = scmp.lt.s32.totalorder %s113_s6, %s113_s6 }
  0x2a   :  { %vm90_vm2 = vcmp.ge.f32.partialorder %v40_v0, 0.0  ;;  %vm91_vm3 = vcmp.ge.f32.partialorder %v41_v1, 0.0  ;;  %v56_v38 = vsub.f32 %v52_v20, %v54_v21  ;;  %v57_v40 = vsub.f32 %v53_v25, %v55_v26  ;;  %p184_p2 = scmp.ne.s32.totalorder %s113_s6, %s183_s7  ;;  %p189_p4 = scmp.lt.s32.totalorder %s183_s7, %s183_s7 }
  0x2b   :  { %v48_v6 = vmul.f32 1.442695, %v46_v4  ;;  %v50_v7 = vmul.f32 1.442695, %v47_v5  ;;  %vm92_vm6 = vmxor %vm88_vm0, %vm90_vm2 }
  0x2c   :  { %vm93_vm7 = vmxor %vm89_vm1, %vm91_vm3  ;;  %p190_p5 = por %p189_p4, %p188_p3 }
  0x2d   :  { %127 = vpow2.f32 %v48_v6 }
  0x2e   :  { %129 = vpow2.f32 %v50_v7  ;;  %p191_p6 = pnand %p190_p5, %p184_p2 }
  0x37   :  { %v128_v8 = vpop.eup %127 }
  0x38   :  { %v130_v9 = vpop.eup %129  ;;  %v58_v10 = vadd.f32 1.0, %v128_v8  ;;  %v61_v12 = vmul.f32 -0.5, %v128_v8  ;;  %v64_v22 = vand.u32 2147483647, %v128_v8 }
  0x39   :  { %v67_v11 = vadd.f32 1.0, %v130_v9  ;;  %v70_v13 = vmul.f32 -0.5, %v130_v9  ;;  %v73_v27 = vand.u32 2147483647, %v130_v9 }
  0x3a   :  { %131 = vlog2.f32 %v58_v10  ;;  %v62_v18 = vadd.f32 1.0, %v61_v12  ;;  %vm255_vm4 = vcmp.lt.f32.partialorder %v64_v22, 0.0004427343 }
  0x3b   :  { %133 = vlog2.f32 %v67_v11  ;;  %v71_v23 = vadd.f32 1.0, %v70_v13  ;;  %vm74_vm5 = vcmp.lt.f32.partialorder %v73_v27, 0.0004427343 }
  0x3c   :  { %135 = vrcp.f32 %v58_v10  ;;  %v63_v31 = vmul.f32 %v128_v8, %v62_v18 }
  0x3d   :  { %137 = vrcp.f32 %v67_v11  ;;  %v72_v35 = vmul.f32 %v130_v9, %v71_v23 }
  0x44   :  { %v132_v15 = vpop.eup %131 }
  0x45   :  { %v134_v17 = vpop.eup %133  ;;  %v60_v30 = vmul.f32 0.6931472, %v132_v15 }
  0x46   :  { %v136_v19 = vpop.eup %135  ;;  %v69_v34 = vmul.f32 0.6931472, %v134_v17 }
  0x47   :  { %v138_v24 = vpop.eup %137  ;;  %v82_v28 = vmul.f32 %v136_v19, %v58_v10  ;;  %v66_v41 = vsel %vm255_vm4, %v63_v31, %v60_v30 }
  0x48   :  { %v83_v29 = vmul.f32 %v138_v24, %v67_v11  ;;  %v75_v43 = vsel %vm74_vm5, %v72_v35, %v69_v34  ;;  %v76_v46 = vadd.f32 %v66_v41, %v56_v38 }
  0x49   :  { %v84_v32 = vsub.f32 2.0, %v82_v28  ;;  %v77_v49 = vadd.f32 %v75_v43, %v57_v40 }
  0x4a   :  { %v85_v36 = vsub.f32 2.0, %v83_v29 }
  0x4b   :  { %v86_v37 = vmul.f32 %v136_v19, %v84_v32 }
  0x4c   :  { %v87_v39 = vmul.f32 %v138_v24, %v85_v36 }
  0x4d   :  { %v94_v42 = vmul.f32 %v128_v8, %v86_v37 }
  0x4e   :  { %v95_v44 = vmul.f32 %v130_v9, %v87_v39 }
  0x4f   :  { %v96_v45 = vsel %vm92_vm6, %v86_v37, %v94_v42 }
  0x50   :  { %v97_v47 = vsel %vm93_vm7, %v87_v39, %v95_v44  ;;  %v98_v48 = vmul.f32 %v96_v45, %v96_v45 }
  0x51   :  { %v99_v50 = vmul.f32 %v97_v47, %v97_v47 }
  0x52   :  { %v100_v51 = vmul.f32 0.25, %v98_v48 }
  0x53   :  { %v101_v52 = vmul.f32 0.25, %v99_v50 }
  0x54   :  { %v102_v53 = vmul.f32 %v100_v51, %v76_v46 }
  0x55   :  { %v103_v54 = vmul.f32 %v101_v52, %v77_v49 }
  0x57   :  { %v104_v55 = vadd.f32 %v103_v54, %v102_v53 }
  0x59   :  { %105 = vst [vmem:[#allocation7] sm:$0xff] %v104_v55 }
  0x5a   :  { %194 = shalt.err (!%p191_p6)
}
  0x5b   :  { %s195_s10 = scalar_lea.hbm %s277_s2, 128 }
  0x5c   :  { %p196_p7 = scmp.ne.s32.totalorder %s277_s2, %s195_s10  ;;  %p199_p8 = scmp.lt.u32.totalorder %s195_s10, %s277_s2 }
  0x5e   :  { %p201_p9 = pnand %p199_p8, %p196_p7 }
  0x60   :  { %204 = shalt.err (!%p201_p9)
}
  0x61   :  { %115 = dma.vmem_to_hbm [thread:$0]  %s113_s6, 128, %s277_s2, [#allocation4]  }
  0x62   :  { %209 = dma.done.wait [#allocation4], 128  }
  0x63   :  { %210 = vsyncadd [#allocation4], 4294967168 }
  0x64   :  { %119 = vsyncpa [#allocation3], 1 }
  0x65   :  { %120 = vsyncpa [#allocation6], 1 }
  0x66   :  { %121 = vsyncpa [#allocation4], 1 }

</bundles_post_ra>
